<compile_context>
chip_gen: v7x
topology: tpu7x:2x2x1
jax: 0.10.0
libtpu: 0.0.40
codegen_flags: <defaults>
</compile_context>

<pallas_src>
import functools

import jax
import jax.numpy as jnp
from jax import lax
from jax.experimental import pallas as pl
from jax.experimental.pallas import tpu as pltpu

EPS_BN = 1e-5


# --------------------------- per-chip configuration --------------------------

@functools.lru_cache(maxsize=None)
def _chip_config():
    """Pick scoped-VMEM budget and tile targets per TPU generation."""
    vmem = 0
    try:
        vmem = int(pltpu.get_tpu_info().vmem_capacity_bytes)
    except Exception:
        vmem = 0
    if vmem >= 96 * 1024 * 1024:
        # v5e / v6e: 128 MiB VMEM -> big tiles, generous scoped budget.
        return dict(vmem_limit=96 * 1024 * 1024, tm=512, tn=512, tk=2048,
                    fullk_budget=72 * 1024 * 1024, rows3x3=1024)
    # v7x (64 MiB physical / 32 MiB scoped) or unknown backend: conservative.
    return dict(vmem_limit=32 * 1024 * 1024, tm=256, tn=256, tk=1024,
                fullk_budget=20 * 1024 * 1024, rows3x3=512)


def _pick_tile(dim, target, gran):
    """Largest tile <= target dividing `dim`, multiple of `gran`; else full dim."""
    if dim <= target:
        return dim
    t = (target // gran) * gran
    while t >= gran:
        if dim % t == 0:
            return t
        t -= gran
    return dim


def _maybe_split_n(m, tm, n, tn):
    """Keep >=2 blocks on a parallel axis when possible (v7x has 2 TensorCores);
    near-free on single-TC chips because the x tile is not re-fetched."""
    if (m // tm) == 1 and (n // tn) == 1 and n >= 256:
        half = _pick_tile(n, n // 2, 128)
        if half < n:
            return half
    return tn


def _fullk_fits(tm, tn, k_dims, extra_bytes, budget):
    """Double-buffered bf16 footprint estimate for a full-K (no k axis) matmul."""
    b = 0
    for k in k_dims:
        b += 2 * (tm * k + k * tn) * 2        # x tile + w tile, 2 buffers, bf16
    b += 2 * tm * tn * 2                      # output tile, 2 buffers
    b += 4 * tm * tn                          # f32 intermediate headroom
    b += extra_bytes
    return b <= budget


def _cpad(c):
    """Round channel counts up to a lane-dense multiple of 128."""
    return ((c + 127) // 128) * 128


# ----------------------------- Pallas kernels --------------------------------

def _mm_shift_kernel(x_ref, w_ref, sh_ref, o_ref, *, relu):
    y = jnp.dot(x_ref[...], w_ref[...], preferred_element_type=jnp.float32)
    y = y + sh_ref[...]
    if relu:
        y = jnp.maximum(y, 0.0)
    o_ref[...] = y.astype(o_ref.dtype)


def _mm_shift_res_kernel(x_ref, w_ref, sh_ref, r_ref, o_ref, *, relu):
    y = jnp.dot(x_ref[...], w_ref[...], preferred_element_type=jnp.float32)
    y = y + sh_ref[...] + r_ref[...].astype(jnp.float32)
    if relu:
        y = jnp.maximum(y, 0.0)
    o_ref[...] = y.astype(o_ref.dtype)


def _dual_mm_shift_kernel(xa_ref, wa_ref, xb_ref, wb_ref, sh_ref, o_ref, *, relu):
    # downsample(1x1) + conv3 accumulated into one epilogue (no identity in HBM)
    y = jnp.dot(xa_ref[...], wa_ref[...], preferred_element_type=jnp.float32)
    y = y + jnp.dot(xb_ref[...], wb_ref[...], preferred_element_type=jnp.float32)
    y = y + sh_ref[...]
    if relu:
        y = jnp.maximum(y, 0.0)
    o_ref[...] = y.astype(o_ref.dtype)


def _mm_shift_acc_kernel(x_ref, w_ref, sh_ref, o_ref, acc_ref, *, relu):
    k = pl.program_id(2)

    @pl.when(k == 0)
    def _():
        acc_ref[...] = jnp.zeros_like(acc_ref)

    acc_ref[...] += jnp.dot(x_ref[...], w_ref[...],
                            preferred_element_type=jnp.float32)

    @pl.when(k == pl.num_programs(2) - 1)
    def _():
        y = acc_ref[...] + sh_ref[...]
        if relu:
            y = jnp.maximum(y, 0.0)
        o_ref[...] = y.astype(o_ref.dtype)


def _mm_shift_res_acc_kernel(x_ref, w_ref, sh_ref, r_ref, o_ref, acc_ref, *, relu):
    k = pl.program_id(2)

    @pl.when(k == 0)
    def _():
        acc_ref[...] = jnp.zeros_like(acc_ref)

    acc_ref[...] += jnp.dot(x_ref[...], w_ref[...],
                            preferred_element_type=jnp.float32)

    @pl.when(k == pl.num_programs(2) - 1)
    def _():
        y = acc_ref[...] + sh_ref[...] + r_ref[...].astype(jnp.float32)
        if relu:
            y = jnp.maximum(y, 0.0)
        o_ref[...] = y.astype(o_ref.dtype)


def _conv3x3_s1_kernel(x_ref, w_ref, sh_ref, o_ref, *, wp, rows_out):
    # Direct stride-1 3x3 conv: the 9 taps are constant-offset flat-row slices
    # of the zero-padded, row-flattened input block, each feeding a full-size
    # MXU matmul accumulated in f32.  Junk border columns are discarded later.
    acc = None
    for i in range(3):
        for j in range(3):
            lhs = x_ref[0, pl.ds(i * wp + j, rows_out), :]
            d = jnp.dot(lhs, w_ref[i * 3 + j], preferred_element_type=jnp.float32)
            acc = d if acc is None else acc + d
    y = acc + sh_ref[...]
    y = jnp.maximum(y, 0.0)            # conv2 of a Bottleneck is always ReLU'd
    o_ref[0, :, :] = y.astype(o_ref.dtype)


def _head_kernel(x_ref, sc_ref, sh_ref, emb_ref, nrm_ref):
    # Fused: global average pool + BatchNorm1d (eval, folded) + L2 normalize.
    x = x_ref[0].astype(jnp.float32)                    # (H*W, C)
    feat = jnp.mean(x, axis=0, keepdims=True)           # (1, C)
    emb_ref[0] = feat * sc_ref[...] + sh_ref[...]
    nsq = jnp.sum(feat * feat, axis=1, keepdims=True)
    nrm_ref[0] = feat * lax.rsqrt(jnp.maximum(nsq, 1e-24))


# ------------------------------ kernel wrappers -------------------------------

def fused_matmul_shift(x2d, w, shift, residual=None, relu=True,
                       out_dtype=jnp.bfloat16):
    """y = [relu](x @ w + shift [+ residual]); BN scale is pre-folded into w."""
    cfg = _chip_config()
    M, K = x2d.shape
    Kw, N = w.shape
    assert K == Kw
    tm = _pick_tile(M, cfg["tm"], 16)      # bf16 packs 2 rows/sublane -> gran 16
    tn = _pick_tile(N, cfg["tn"], 128)
    tn = _maybe_split_n(M, tm, N, tn)
    sh = shift.reshape(1, N).astype(jnp.float32)

    extra = (2 * tm * tn * 2) if residual is not None else 0
    if _fullk_fits(tm, tn, (K,), extra, cfg["fullk_budget"]):
        grid = (M // tm, N // tn)
        x_spec = pl.BlockSpec((tm, K), lambda i, j: (i, 0))
        w_spec = pl.BlockSpec((K, tn), lambda i, j: (0, j))
        s_spec = pl.BlockSpec((1, tn), lambda i, j: (0, j))
        o_spec = pl.BlockSpec((tm, tn), lambda i, j: (i, j))
        if residual is None:
            kernel = functools.partial(_mm_shift_kernel, relu=relu)
            inputs, in_specs = (x2d, w, sh), [x_spec, w_spec, s_spec]
        else:
            kernel = functools.partial(_mm_shift_res_kernel, relu=relu)
            inputs, in_specs = (x2d, w, sh, residual), [x_spec, w_spec, s_spec, o_spec]
        return pl.pallas_call(
            kernel,
            out_shape=jax.ShapeDtypeStruct((M, N), out_dtype),
            grid_spec=pltpu.PrefetchScalarGridSpec(
                num_scalar_prefetch=0, grid=grid,
                in_specs=in_specs, out_specs=o_spec),
            compiler_params=pltpu.CompilerParams(
                dimension_semantics=("parallel", "parallel"),
                vmem_limit_bytes=cfg["vmem_limit"]),
        )(*inputs)

    # Fallback: k-grid with f32 VMEM accumulator (not hit for ResNet-50 shapes).
    tk = _pick_tile(K, cfg["tk"], 128)
    grid = (M // tm, N // tn, K // tk)
    x_spec = pl.BlockSpec((tm, tk), lambda i, j, k: (i, k))
    w_spec = pl.BlockSpec((tk, tn), lambda i, j, k: (k, j))
    s_spec = pl.BlockSpec((1, tn), lambda i, j, k: (0, j))
    o_spec = pl.BlockSpec((tm, tn), lambda i, j, k: (i, j))
    if residual is None:
        kernel = functools.partial(_mm_shift_acc_kernel, relu=relu)
        inputs, in_specs = (x2d, w, sh), [x_spec, w_spec, s_spec]
    else:
        kernel = functools.partial(_mm_shift_res_acc_kernel, relu=relu)
        inputs, in_specs = (x2d, w, sh, residual), [x_spec, w_spec, s_spec, o_spec]
    return pl.pallas_call(
        kernel,
        out_shape=jax.ShapeDtypeStruct((M, N), out_dtype),
        grid_spec=pltpu.PrefetchScalarGridSpec(
            num_scalar_prefetch=0, grid=grid,
            in_specs=in_specs, out_specs=o_spec,
            scratch_shapes=[pltpu.VMEM((tm, tn), jnp.float32)]),
        compiler_params=pltpu.CompilerParams(
            dimension_semantics=("parallel", "parallel", "arbitrary"),
            vmem_limit_bytes=cfg["vmem_limit"]),
    )(*inputs)


def fused_dual_matmul_shift(xa, wa, sha, xb, wb, shb, relu=True,
                            out_dtype=jnp.bfloat16):
    """y = relu(xa @ wa + xb @ wb + sha + shb): downsample + conv3 fused."""
    cfg = _chip_config()
    M, Ka = xa.shape
    Mb, Kb = xb.shape
    assert M == Mb
    N = wa.shape[1]
    assert wb.shape[1] == N
    tm = _pick_tile(M, cfg["tm"], 16)
    tn = _pick_tile(N, cfg["tn"], 128)
    tn = _maybe_split_n(M, tm, N, tn)
    if not _fullk_fits(tm, tn, (Ka, Kb), 0, cfg["fullk_budget"]):
        # Fallback: materialize the downsample branch, then residual-fused conv3.
        ident = fused_matmul_shift(xa, wa, sha, relu=False)
        return fused_matmul_shift(xb, wb, shb, residual=ident, relu=relu)
    sh = (sha.astype(jnp.float32) + shb.astype(jnp.float32)).reshape(1, N)
    grid = (M // tm, N // tn)
    xa_spec = pl.BlockSpec((tm, Ka), lambda i, j: (i, 0))
    wa_spec = pl.BlockSpec((Ka, tn), lambda i, j: (0, j))
    xb_spec = pl.BlockSpec((tm, Kb), lambda i, j: (i, 0))
    wb_spec = pl.BlockSpec((Kb, tn), lambda i, j: (0, j))
    s_spec = pl.BlockSpec((1, tn), lambda i, j: (0, j))
    o_spec = pl.BlockSpec((tm, tn), lambda i, j: (i, j))
    return pl.pallas_call(
        functools.partial(_dual_mm_shift_kernel, relu=relu),
        out_shape=jax.ShapeDtypeStruct((M, N), out_dtype),
        grid_spec=pltpu.PrefetchScalarGridSpec(
            num_scalar_prefetch=0, grid=grid,
            in_specs=[xa_spec, wa_spec, xb_spec, wb_spec, s_spec],
            out_specs=o_spec),
        compiler_params=pltpu.CompilerParams(
            dimension_semantics=("parallel", "parallel"),
            vmem_limit_bytes=cfg["vmem_limit"]),
    )(xa, wa, xb, wb, sh)


def conv1x1_fused(x_nhwc, w, shift, stride=1, relu=True):
    B, H, W, C = x_nhwc.shape
    if stride > 1:
        x_nhwc = x_nhwc[:, ::stride, ::stride, :]
    Ho, Wo = x_nhwc.shape[1], x_nhwc.shape[2]
    out = fused_matmul_shift(x_nhwc.reshape(B * Ho * Wo, C), w, shift, relu=relu)
    return out.reshape(B, Ho, Wo, -1)


def conv3x3_s1_fused(x_nhwc, w9, shift):
    """Direct stride-1 3x3 conv + folded BN + ReLU; taps folded in-kernel.

    The input is zero-padded (top 1, bottom 2, left/right 1), split into
    H row-blocks and row-flattened; each tap's contribution is a contiguous
    flat slice at constant offset i*(W+2)+j, so no im2col slab is written to
    HBM.  The two junk columns per row (reads wrapping into the next padded
    row) are sliced off afterwards.
    """
    cfg = _chip_config()
    B, H, W, C = x_nhwc.shape
    _, Cw, N = w9.shape
    assert C == Cw
    wp = W + 2
    th = 1
    for cand in range(1, H + 1):
        if H % cand == 0 and cand * wp <= max(cfg["rows3x3"], wp):
            th = cand
    nhb = H // th
    rows_in = (th + 3) * wp
    rows_out = th * wp
    xp = jnp.pad(x_nhwc, ((0, 0), (1, 2), (1, 1), (0, 0)))       # (B, H+3, W+2, C)
    if nhb == 1:
        xb = xp.reshape(B, rows_in, C)
    else:
        xb = jnp.stack([xp[:, k * th: k * th + th + 3] for k in range(nhb)], axis=1)
        xb = xb.reshape(B * nhb, rows_in, C)
    tn = _pick_tile(N, cfg["tn"], 128)
    mb = B * nhb
    grid = (mb, N // tn)
    sh = shift.reshape(1, N).astype(jnp.float32)
    out = pl.pallas_call(
        functools.partial(_conv3x3_s1_kernel, wp=wp, rows_out=rows_out),
        out_shape=jax.ShapeDtypeStruct((mb, rows_out, N), jnp.bfloat16),
        grid_spec=pltpu.PrefetchScalarGridSpec(
            num_scalar_prefetch=0, grid=grid,
            in_specs=[pl.BlockSpec((1, rows_in, C), lambda m, n: (m, 0, 0)),
                      pl.BlockSpec((9, C, tn), lambda m, n: (0, 0, n)),
                      pl.BlockSpec((1, tn), lambda m, n: (0, n))],
            out_specs=pl.BlockSpec((1, rows_out, tn), lambda m, n: (m, 0, n))),
        compiler_params=pltpu.CompilerParams(
            dimension_semantics=("parallel", "parallel"),
            vmem_limit_bytes=cfg["vmem_limit"]),
    )(xb, w9, sh)
    out = out.reshape(B, H, wp, N)[:, :, :W, :]    # drop the 2 junk columns
    return out


def conv_im2col_fused(x_nhwc, w2d, shift, kh, kw, stride, padding, relu=True):
    """Conv via XLA im2col + fused Pallas matmul (7x7 stem, stride-2 3x3 only)."""
    B, H, W, C = x_nhwc.shape
    Ho = (H + 2 * padding - kh) // stride + 1
    Wo = (W + 2 * padding - kw) // stride + 1
    xp = jnp.pad(x_nhwc, ((0, 0), (padding, padding), (padding, padding), (0, 0)))
    pieces = []
    for i in range(kh):
        for j in range(kw):
            pieces.append(lax.slice(
                xp, (0, i, j, 0),
                (B, i + (Ho - 1) * stride + 1, j + (Wo - 1) * stride + 1, C),
                (1, stride, stride, 1)))
    cols = jnp.concatenate(pieces, axis=-1).reshape(B * Ho * Wo, kh * kw * C)
    Kw = w2d.shape[0]
    if Kw > cols.shape[1]:                       # e.g. stem 147 -> 256 lane pad
        cols = jnp.pad(cols, ((0, 0), (0, Kw - cols.shape[1])))
    out = fused_matmul_shift(cols, w2d, shift, relu=relu)
    return out.reshape(B, Ho, Wo, -1)


def maxpool_3x3_s2(x_nhwc):
    # Memory-bound op; lax.reduce_window avoids materializing 9 tap copies.
    neg = jnp.array(-jnp.inf, dtype=x_nhwc.dtype)
    return lax.reduce_window(
        x_nhwc, neg, lax.max,
        window_dimensions=(1, 3, 3, 1),
        window_strides=(1, 2, 2, 1),
        padding=((0, 0), (1, 1), (1, 1), (0, 0)))


def head_pool_bn_normalize(x_nhwc, scale, shift):
    cfg = _chip_config()
    B, H, W, C = x_nhwc.shape
    x3 = x_nhwc.reshape(B, H * W, C)
    sc = scale.reshape(1, C).astype(jnp.float32)
    sh = shift.reshape(1, C).astype(jnp.float32)
    emb, nrm = pl.pallas_call(
        _head_kernel,
        out_shape=(jax.ShapeDtypeStruct((B, 1, C), jnp.float32),
                   jax.ShapeDtypeStruct((B, 1, C), jnp.float32)),
        grid_spec=pltpu.PrefetchScalarGridSpec(
            num_scalar_prefetch=0, grid=(B,),
            in_specs=[pl.BlockSpec((1, H * W, C), lambda b: (b, 0, 0)),
                      pl.BlockSpec((1, C), lambda b: (0, 0)),
                      pl.BlockSpec((1, C), lambda b: (0, 0))],
            out_specs=(pl.BlockSpec((1, 1, C), lambda b: (b, 0, 0)),
                       pl.BlockSpec((1, 1, C), lambda b: (b, 0, 0)))),
        compiler_params=pltpu.CompilerParams(
            dimension_semantics=("parallel",),
            vmem_limit_bytes=cfg["vmem_limit"]),
    )(x3, sc, sh)
    return emb.reshape(B, C), nrm.reshape(B, C)


# ------------------------------- parameters ----------------------------------

def _kaiming(key, kh, kw, cin, cout):
    # nn.init.kaiming_normal_(mode='fan_out', nonlinearity='relu')
    fan_out = cout * kh * kw
    std = (2.0 / fan_out) ** 0.5
    return jax.random.normal(key, (kh, kw, cin, cout), jnp.float32) * std


def _bn_init(c):
    # gamma=1, beta=0, running_mean=0, running_var=1 (inference-mode BN)
    scale = jnp.full((c,), 1.0 / (1.0 + EPS_BN) ** 0.5, jnp.float32)
    shift = jnp.zeros((c,), jnp.float32)
    return scale, shift


def _pad_shift(shift, c_p):
    return jnp.pad(shift, (0, c_p - shift.shape[0]))


def _fold_pad_1x1(w, scale, cin_p, cout_p):
    _, _, cin, cout = w.shape
    w2 = w.reshape(cin, cout) * scale[None, :]
    w2 = jnp.pad(w2, ((0, cin_p - cin), (0, cout_p - cout)))
    return w2.astype(jnp.bfloat16)


def _fold_pad_3x3(w, scale, cin_p, cout_p):
    _, _, cin, cout = w.shape
    w2 = w.reshape(9, cin, cout) * scale[None, None, :]
    w2 = jnp.pad(w2, ((0, 0), (0, cin_p - cin), (0, cout_p - cout)))
    return w2.astype(jnp.bfloat16)


def _fold_pad_stem(w, scale, k_p, cout_p):
    kh, kw, cin, cout = w.shape
    w2 = w.reshape(kh * kw * cin, cout) * scale[None, :]
    w2 = jnp.pad(w2, ((0, k_p - kh * kw * cin), (0, cout_p - cout)))
    return w2.astype(jnp.bfloat16)


def build_params(seed=0, layers=(3, 4, 6, 3), last_stride=2):
    key = jax.random.PRNGKey(seed)

    def nk():
        nonlocal key
        key, sub = jax.random.split(key)
        return sub

    params = {}
    sc1, sh1 = _bn_init(64)
    # stem: K padded 147 -> 256, out channels 64 -> 128 (lane-dense stores)
    params["w_stem"] = _fold_pad_stem(_kaiming(nk(), 7, 7, 3, 64), sc1, 256, 128)
    params["sh_stem"] = _pad_shift(sh1, 128)

    inplanes, inplanes_p = 64, 128
    stage_planes = (64, 128, 256, 512)
    stage_strides = (1, 2, 2, last_stride)
    params["stages"] = []
    for planes, nblocks, stride in zip(stage_planes, layers, stage_strides):
        blocks = []
        for b in range(nblocks):
            s = stride if b == 0 else 1
            width = planes                        # base_width=64, groups=1
            width_p = _cpad(width)
            out_c = planes * 4
            out_p = _cpad(out_c)
            sc_a, sh_a = _bn_init(width)
            sc_b, sh_b = _bn_init(width)
            sc_c, sh_c = _bn_init(out_c)
            blk = {
                "stride": s,
                "w1": _fold_pad_1x1(_kaiming(nk(), 1, 1, inplanes, width),
                                    sc_a, inplanes_p, width_p),
                "sh1": _pad_shift(sh_a, width_p),
                "w2": _fold_pad_3x3(_kaiming(nk(), 3, 3, width, width),
                                    sc_b, width_p, width_p),
                "sh2": _pad_shift(sh_b, width_p),
                "w3": _fold_pad_1x1(_kaiming(nk(), 1, 1, width, out_c),
                                    sc_c, width_p, out_p),
                "sh3": _pad_shift(sh_c, out_p),
            }
            if b == 0 and (s != 1 or inplanes != out_c):
                sc_d, sh_d = _bn_init(out_c)
                blk["wd"] = _fold_pad_1x1(_kaiming(nk(), 1, 1, inplanes, out_c),
                                          sc_d, inplanes_p, out_p)
                blk["shd"] = _pad_shift(sh_d, out_p)
            blocks.append(blk)
            inplanes, inplanes_p = out_c, out_p
        params["stages"].append(blocks)
    params["head_bn"] = _bn_init(inplanes)        # embedding dim = 2048
    return params


# --------------------------------- forward -----------------------------------

def bottleneck_forward(x, blk):
    B = x.shape[0]
    out = conv1x1_fused(x, blk["w1"], blk["sh1"], relu=True)
    if blk["stride"] == 1:
        out = conv3x3_s1_fused(out, blk["w2"], blk["sh2"])
    else:
        # TODO(synk): stride-2 3x3 still goes through an XLA im2col slab.
        out = conv_im2col_fused(out, blk["w2"].reshape(-1, blk["w2"].shape[-1]),
                                blk["sh2"], 3, 3, blk["stride"], 1, relu=True)
    Ho, Wo = out.shape[1], out.shape[2]
    out2d = out.reshape(B * Ho * Wo, out.shape[3])
    n_out = blk["w3"].shape[1]
    if "wd" in blk:
        xs = x[:, ::blk["stride"], ::blk["stride"], :] if blk["stride"] > 1 else x
        xa2d = xs.reshape(B * Ho * Wo, xs.shape[3])
        y = fused_dual_matmul_shift(xa2d, blk["wd"], blk["shd"],
                                    out2d, blk["w3"], blk["sh3"], relu=True)
    else:
        res2d = x.reshape(B * Ho * Wo, x.shape[3])
        y = fused_matmul_shift(out2d, blk["w3"], blk["sh3"],
                               residual=res2d, relu=True)
    return y.reshape(B, Ho, Wo, n_out)


def separable_resnet_forward(params, x_nchw, domain_indices=0):
    # domain_indices selects the per-domain BN copy; all copies are identical
    # at init, so domain-0 parameters are used regardless of the index.
    del domain_indices
    x = jnp.transpose(x_nchw, (0, 2, 3, 1)).astype(jnp.bfloat16)  # NCHW -> NHWC
    # stem: 7x7/s2 conv + BN + ReLU, then 3x3/s2 maxpool
    x = conv_im2col_fused(x, params["w_stem"], params["sh_stem"],
                          7, 7, 2, 3, relu=True)
    x = maxpool_3x3_s2(x)
    # four bottleneck stages
    for blocks in params["stages"]:
        for blk in blocks:
            x = bottleneck_forward(x, blk)
    feature_map = jnp.transpose(x, (0, 3, 1, 2)).astype(jnp.float32)  # NCHW
    # fused: global avg pool (last_pooling='avg') + head BN + L2 normalize
    emb, gfeat = head_pool_bn_normalize(x, *params["head_bn"])
    return {"embedding": emb, "global": gfeat, "map": feature_map}


# ----------------------------------- main -------------------------------------

if __name__ == "__main__":
    key = jax.random.PRNGKey(0)
    x = jax.random.normal(key, (2, 3, 64, 64), jnp.float32)   # NCHW, like PyTorch
    params = build_params(seed=0, layers=(3, 4, 6, 3), last_stride=2)

    out = separable_resnet_forward(params, x, domain_indices=0)
    out = jax.block_until_ready(out)

    assert out["map"].shape == (2, 2048, 2, 2)
    assert out["embedding"].shape == (2, 2048)
    assert out["global"].shape == (2, 2048)
    assert jnp.all(jnp.isfinite(out["embedding"]))
    assert jnp.all(jnp.isfinite(out["global"]))
    print("KERNEL_OK")
</pallas_src>

<mosaic_0001>
module attributes {stable_mosaic.version = 11 : i64} {
  func.func @_mm_shift_kernel(%arg0: i32, %arg1: i32, %arg2: memref<256x256xbf16, #tpu.memory_space<vmem>>, %arg3: memref<256x128xbf16, #tpu.memory_space<vmem>>, %arg4: memref<1x128xf32, #tpu.memory_space<vmem>>, %arg5: memref<256x128xbf16, #tpu.memory_space<vmem>>) attributes {dimension_semantics = [#tpu.dimension_semantics<parallel>, #tpu.dimension_semantics<parallel>], iteration_bounds = array<i64: 8, 1>, scalar_prefetch = 0 : i64, scratch_operands = 0 : i64, tpu.core_type = #tpu.core_type<tc>, window_params = [{transform_indices = @transform_0, window_bounds = array<i64: 256, 256>}, {transform_indices = @transform_1, window_bounds = array<i64: 256, 128>}, {transform_indices = @transform_2, window_bounds = array<i64: 1, 128>}, {transform_indices = @transform_3, window_bounds = array<i64: 256, 128>}]} {
    %c0 = arith.constant 0 : index
    %c0_0 = arith.constant 0 : index
    %0 = vector.load %arg2[%c0, %c0_0] : memref<256x256xbf16, #tpu.memory_space<vmem>>, vector<256x256xbf16>
    %c0_1 = arith.constant 0 : index
    %c0_2 = arith.constant 0 : index
    %1 = vector.load %arg3[%c0_1, %c0_2] : memref<256x128xbf16, #tpu.memory_space<vmem>>, vector<256x128xbf16>
    %cst = arith.constant dense<0.000000e+00> : vector<256x128xf32>
    %2 = tpu.matmul %0, %1, %cst {dimension_numbers = #tpu.dot_dimension_numbers<[1], [0], [0], [1], [0, 0, 1, 1], [], []>} : vector<256x256xbf16>, vector<256x128xbf16>, vector<256x128xf32> -> vector<256x128xf32>
    %c0_3 = arith.constant 0 : index
    %c0_4 = arith.constant 0 : index
    %3 = vector.load %arg4[%c0_3, %c0_4] : memref<1x128xf32, #tpu.memory_space<vmem>>, vector<1x128xf32>
    %4 = vector.broadcast %3 : vector<1x128xf32> to vector<256x128xf32>
    %5 = arith.addf %2, %4 : vector<256x128xf32>
    %cst_5 = arith.constant 0.000000e+00 : f32
    %6 = vector.broadcast %cst_5 : f32 to vector<256x128xf32>
    %7 = arith.maximumf %5, %6 : vector<256x128xf32>
    %8 = arith.truncf %7 : vector<256x128xf32> to vector<256x128xbf16>
    %c0_6 = arith.constant 0 : index
    %c0_7 = arith.constant 0 : index
    %9 = vector.load %arg5[%c0_6, %c0_7] : memref<256x128xbf16, #tpu.memory_space<vmem>>, vector<256x128xbf16>
    tpu.vector_store %arg5[%c0_6, %c0_7], %8 {strides = array<i32>} : memref<256x128xbf16, #tpu.memory_space<vmem>>, vector<256x128xbf16>,
    return
  }
  func.func @transform_0(%arg0: i32, %arg1: i32) -> (i32, i32) {
    %c0_i32 = arith.constant 0 : i32
    %c0_i32_0 = arith.constant 0 : i32
    return %arg0, %c0_i32 : i32, i32
  }
  func.func @transform_1(%arg0: i32, %arg1: i32) -> (i32, i32) {
    %c0_i32 = arith.constant 0 : i32
    %c0_i32_0 = arith.constant 0 : i32
    return %c0_i32, %arg1 : i32, i32
  }
  func.func @transform_2(%arg0: i32, %arg1: i32) -> (i32, i32) {
    %c0_i32 = arith.constant 0 : i32
    %c0_i32_0 = arith.constant 0 : i32
    return %c0_i32, %arg1 : i32, i32
  }
  func.func @transform_3(%arg0: i32, %arg1: i32) -> (i32, i32) {
    %c0_i32 = arith.constant 0 : i32
    return %arg0, %arg1 : i32, i32
  }
}

</mosaic_0001>

<bundles_post_ra>
// kernel: tpu_custom_call.1
= control target key start
LH: loop header
LB: loop body
LE: loop exit
PB: predicated region body
PF: predicated region fallthrough
CT: control target
= control target key end

     0   :  { %8 = vsyncpa [#allocation3], 0  ;;  %s2029_s0 = inlined_call_operand.hbm [shape: bf16[2048,256], index: 0, kind: input, shape index: {}]   ;;  %s2030_s1 = inlined_call_operand.hbm [shape: bf16[256,128], index: 1, kind: input, shape index: {}]   ;;  %s2031_s2 = inlined_call_operand.vmem [shape: f32[1,128], index: 2, kind: input, shape index: {}]   ;;  %s2032_s3 = inlined_call_operand.hbm [shape: bf16[2048,128], index: 3, kind: output, shape index: {}]  }
   0x1   :  { %10 = vsyncpa [#allocation3 + $0x1], 0 }
   0x2   :  { %11 = vsyncpa [#allocation6], 0 }
   0x3   :  { %12 = vsyncpa [#allocation4], 0 }
   0x4   :  { %14 = vsyncpa [#allocation4 + $0x1], 0  ;;  %s1721_s12 = smov 0   ;;  %s1723_s13 = smov 0  }
   0x5   :  { %s1725_s14 = smov 0   ;;  %s1727_s15 = smov 0  }
   0x6   :  { %s1729_s16 = smov 0   ;;  %s1731_s17 = smov 0  }
   0x7 LB: > { %s1045_s18 = sadd.s32 4294967295, %s1690_s17   ;;  %s1046_s19 = sadd.s32 4294967294, %s1690_s17   ;;  %s1690_s17 = sphi %s1731_s17, %s20_s17   ;;  %s1686_s16 = sphi %s1729_s16, %s2055_s16   ;;  %s1682_s15 = sphi %s1727_s15, %s2054_s15   ;;  %s1678_s14 = sphi %s1725_s14, %s2053_s14   ;;  %s1674_s13 = sphi %s1723_s13, %s2052_s13   ;;  %s1670_s12 = sphi %s1721_s12, %s2051_s12  }
   0x8   : > { %p52_p0 = scmp.ne.s32.totalorder %s1674_s13, %s1670_s12  ;;  %p1755_p1 = scmp.eq.s32.totalorder %s1045_s18, 0 }
   0x9   : > { %p1759_p2 = scmp.eq.s32.totalorder %s1045_s18, 7  ;;  %p136_p3 = scmp.eq.s32.totalorder %s1046_s19, 7 }
   0xa   : > { %s2037_s20 = scalar_select %p1755_p1, 1, 0 }
   0xb   : > { %s2038_s21 = scalar_select %p1759_p2, 1, 0 }
   0xc   : > { %p1765_p4 = por %p1755_p1, %p52_p0  ;;  %p1047_p5 = scmp.ge.s32.totalorder %s1690_s17, 1 }
   0xd   : > { %p1770_p6 = por %p136_p3, %p52_p0  ;;  %p143_p7 = scmp.lt.s32.totalorder %s1690_s17, 9 }
   0xe   : > { %s2039_s22 = scalar_select %p1765_p4, 1, 0 }
   0xf   : > { %s2040_s23 = scalar_select %p1770_p6, 1, 0 }
  0x10   : > { %p1775_p8 = pnand %p1047_p5, %p143_p7  ;;  %s1692_s25 = smov [#allocation5]  }
  0x11   : > { %s157_s26 = sshll.u32 %s1692_s25, 4  ;;  %s32_s28 = sadd.s32 1, %s1686_s16  ;;  %s158_s26 = int_to_ptr.vmem [resolvable:$true] %s157_s26 }
  0x12   : > { %s2041_s24 = scalar_select %p1775_p8, 1, 0 }
  0x13   : > { %p1411_p9 = pneg %p1775_p8  ;;  %s1546_s4 = scalar_lea.hbm %s2030_s1, 2048 }
  0x14   : > { %p1547_p11 = scmp.ne.s32.totalorder %s2030_s1, %s1546_s4  ;;  %p1553_p3 = scmp.lt.u32.totalorder %s1546_s4, %s2030_s1 }
  0x15   : > { %p1783_p10 = pnand %p1411_p9, %p1755_p1 }
  0x17   : > { %p1548_p12 = pneg %p1783_p10 }
  0x19   : > { %p1549_p13 = pnand %p1548_p12, %p1547_p11 }
  0x1b   : > { %p1550_p0 = pneg %p1549_p13 }
  0x1d   : > { %p1555_p5 = pnand %p1553_p3, %p1550_p0 }
  0x1f   : > { %1558 = shalt.err (!%p1555_p5)
}
  0x20   : > { %s1559_s9 = scalar_lea.vmem %s158_s26, 2048  ;;  %p1567_p1 = scmp.lt.s32.totalorder %s158_s26, %s158_s26 }
  0x21   : > { %p1560_p7 = scmp.ne.s32.totalorder %s158_s26, %s1559_s9  ;;  %p1568_p4 = scmp.lt.s32.totalorder %s1559_s9, %s1559_s9 }
  0x23   : > { %p1562_p9 = pnand %p1560_p7, %p1548_p12  ;;  %p1569_p8 = por %p1568_p4, %p1567_p1 }
  0x25   : > { %p1563_p6 = pneg %p1562_p9 }
  0x27   : > { %p1570_p2 = pnand %p1569_p8, %p1563_p6 }
  0x29   : > { %1573 = shalt.err (!%p1570_p2)
}
  0x2a   : > { %s1693_s10 = smov 64   ;;  %s1694_s11 = smov 4  }
  0x2b   : > { %1414 = dma.hbm_to_vmem [thread:$0]  (!%p1783_p10), %s2030_s1, 2048, %s158_s26, [#allocation6], %s1693_s10, %s1693_s10, %s1694_s11  }
  0x2c   : > { %p34_p1 = scmp.ge.s32.totalorder %s32_s28, 8  ;;  %s39_s25 = sadd.s32 1, %s1678_s14 }
  0x2d   : > { %p46_p2 = scmp.ne.s32.totalorder %s1678_s14, %s1674_s13  ;;  %p47_p4 = scmp.eq.s32.totalorder %s1690_s17, 0 }
  0x2e   : > { %s2057_s28 = smov (%p34_p1, %s32_s28), 0  ;;  %p2044_p8 = scmp.ne.s32.totalorder %s2038_s21, 0 }
  0x2f   : > { %p1810_p6 = por %p47_p4, %p46_p2  ;;  %s36_s27 = ssub.s32 %s1686_s16, %s2057_s28 }
  0x30   : > { %p1816_p11 = por %p2044_p8, %p46_p2  ;;  %p1424_p12 = scmp.lt.s32.totalorder %s1690_s17, 8 }
  0x31   : > { %p37_p10 = scmp.eq.s32.totalorder %s36_s27, 0  ;;  %s177_s26 = sand.u32 1, %s1678_s14  }
  0x32   : > { %s1051_s4 = sshll.u32 %s177_s26, 8  ;;  %s1146_s6 = sshll.u32 %s1686_s16, 12 }
  0x33   : > { %s1825_s5 = scalar_select %p37_p10, %s1678_s14, %s39_s25  }
  0x34   : > { %s1831_s9 = scalar_lea.hbm %s2029_s0, %s1146_s6  ;;  %s181_s21 = scalar_lea.vmem [#allocation2], %s1051_s4 }
  0x35   : > { %s189_s10 = sshll.u32 %s181_s21, 4  ;;  %p1837_p13 = pnand %p1424_p12, %p1810_p6  ;;  %s1833_s10 = int_to_ptr.vmem [resolvable:$true] %s189_s10 }
  0x36   : > { %s1841_s18 = scalar_lea.sflag [#allocation3], %s177_s26  ;;  %s1574_s19 = scalar_lea.hbm %s1831_s9, 4096 }
  0x37   : > { %p1575_p0 = scmp.ne.s32.totalorder %s1831_s9, %s1574_s19  ;;  %p1576_p3 = pneg %p1837_p13 }
  0x38   : > { %s1579_s29 = scalar_lea.hbm %s2029_s0, 32768  ;;  %p1580_p9 = scmp.lt.u32.totalorder %s1831_s9, %s2029_s0 }
  0x39   : > { %p1577_p5 = pnand %p1576_p3, %p1575_p0  ;;  %p1581_p1 = scmp.lt.u32.totalorder %s1579_s29, %s1574_s19 }
  0x3a   : > { %p1583_p4 = scmp.lt.u32.totalorder %s1574_s19, %s1831_s9 }
  0x3b   : > { %p1578_p7 = pneg %p1577_p5  ;;  %p1582_p2 = por %p1581_p1, %p1580_p9 }
  0x3d   : > { %p1584_p6 = por %p1583_p4, %p1582_p2 }
  0x3f   : > { %p1585_p8 = pnand %p1584_p6, %p1578_p7 }
  0x41   : > { %1588 = shalt.err (!%p1585_p8)
}
  0x42   : > { %s1589_s26 = scalar_lea.vmem %s1833_s10, 4096  ;;  %s1695_s7 = smov [#allocation2]  }
  0x43   : > { %p1590_p12 = scmp.ne.s32.totalorder %s1833_s10, %s1589_s26  ;;  %s1594_s8 = sshll.u32 %s1695_s7, 4  ;;  %s1595_s8 = int_to_ptr.vmem [resolvable:$false] %s1594_s8 }
  0x44   : > { %s1596_s21 = scalar_lea.vmem %s1595_s8, 8192  ;;  %p1597_p5 = scmp.lt.s32.totalorder %s1833_s10, %s1595_s8 }
  0x45   : > { %p1592_p10 = pnand %p1590_p12, %p1576_p3  ;;  %p1598_p9 = scmp.lt.s32.totalorder %s1596_s21, %s1589_s26 }
  0x47   : > { %p1593_p0 = pneg %p1592_p10  ;;  %p1599_p1 = por %p1598_p9, %p1597_p5 }
  0x49   : > { %p1600_p2 = pnand %p1599_p1, %p1593_p0 }
  0x4b   : > { %1603 = shalt.err (!%p1600_p2)
}
  0x4c   : > { %s1696_s19 = smov 128   ;;  %s1697_s25 = smov 8  }
  0x4d   : > { %1418 = dma.hbm_to_vmem [thread:$0]  (!%p1837_p13), %s1831_s9, 4096, %s1833_s10, %s1841_s18, %s1696_s19, %s1696_s19, %s1697_s25  }
  0x4e   : > { %p2047_p3 = scmp.ne.s32.totalorder %s2041_s24, 0 }
  0x4f   : > { %s1872_s27 = sand.u32 (!%p2047_p3), 1, %s1674_s13   ;;  %p2048_p7 = scmp.ne.s32.totalorder (!%p2047_p3), %s2039_s22, 0 }
  0x50   : > { %201 = sbr.rel (%p2047_p3) target bundleno = 419 (0x1a3), region = 32  ;;  %s1056_s29 = sshll.u32 (!%p2047_p3), %s1872_s27, 8 }
  0x51   : > { %s204_s4 = scalar_lea.sflag (!%p2047_p3), [#allocation3], %s1872_s27  ;;  %s1876_s6 = scalar_lea.vmem (!%p2047_p3), [#allocation2], %s1056_s29 }
  0x57   : > { %1657 = dma.done.wait (%p2048_p7), %s204_s4, 4096  }
  0x58   : > { %1659 = vsyncadd (%p2048_p7), %s204_s4, 4294963200  ;;  %p2049_p13 = scmp.ne.s32.totalorder %s2037_s20, 0 }
  0x5a   : > { %1661 = dma.done.wait (%p2049_p13), [#allocation6], 2048  }
  0x5b   : > { %1663 = vsyncadd (%p2049_p13), [#allocation6], 4294965248  ;;  %v1482_v0 = vld [vmem:[#allocation5 + $0x40] sm:$0xff]   ;;  %v1484_v2 = vld [vmem:[#allocation5 + $0x48] sm:$0xff]   ;;  %s1058_s24 = sshll.u32 %s1872_s27, 7  ;;  %s1179_s10 = sshll.u32 %s1682_s15, 11 }
  0x5c   : > { %v1483_v1 = vld [vmem:[#allocation5] sm:$0xff]   ;;  %1275 = vmatprep.subr.bf16.mxu0 %v1482_v0  ;;  %1387 = vmatprep.subr.bf16.mxu1 %v1482_v0  ;;  %v1485_v3 = vld [vmem:[#allocation5 + $0x8] sm:$0xff]   ;;  %v1486_v4 = vld [vmem:[#allocation5 + $0x50] sm:$0xff]   ;;  %s1928_s9 = scalar_lea.vmem [#allocation7], %s1058_s24  ;;  %s1977_s7 = scalar_lea.hbm %s2032_s3, %s1179_s10 }
  0x5d   : > { %1276 = vmatpush3.bf16.msra.mxu0 %v1483_v1  ;;  %1395 = vmatpush3.bf16.msra.mxu1 %v1483_v1  ;;  %v1487_v5 = vld [vmem:[#allocation5 + $0x10] sm:$0xff]   ;;  %v1488_v6 = vld [vmem:[#allocation5 + $0x58] sm:$0xff]   ;;  %v1490_v8 = vld [vmem:[#allocation5 + $0x60] sm:$0xff]   ;;  %s938_s11 = sshll.u32 %s1928_s9, 4  ;;  %s924_s15 = scalar_lea.sflag [#allocation4], %s1872_s27  ;;  %s1979_s11 = int_to_ptr.vmem [resolvable:$true] %s938_s11 }
  0x5e   : > { %1277 = vmatprep.subr.bf16.mxu0 %v1484_v2  ;;  %1388 = vmatprep.subr.bf16.mxu1 %v1484_v2  ;;  %v1489_v7 = vld [vmem:[#allocation5 + $0x18] sm:$0xff]   ;;  %v1491_v9 = vld [vmem:[#allocation5 + $0x20] sm:$0xff]   ;;  %v1492_v10 = vld [vmem:[#allocation5 + $0x68] sm:$0xff]   ;;  %s1604_s8 = scalar_lea.vmem %s1979_s11, 2048  ;;  %s1698_s21 = smov [#allocation7]  }
  0x5f   : > { %v1500_v11 = vld [vmem:[%s1876_s6 + $0x4] ss:$8 sps:$4 sm:$0xff]   ;;  %v1494_v14 = vld [vmem:[#allocation5 + $0x70] sm:$0xff]   ;;  %v1496_v16 = vld [vmem:[#allocation5 + $0x78] sm:$0xff]   ;;  %p1605_p4 = scmp.ne.s32.totalorder %s1979_s11, %s1604_s8  ;;  %s1608_s19 = sshll.u32 %s1698_s21, 4  ;;  %s1609_s19 = int_to_ptr.vmem [resolvable:$false] %s1608_s19 }
  0x60   : > { %v1503_v12 = vld [vmem:[%s1876_s6 + $0x84] ss:$8 sps:$4 sm:$0xff]   ;;  %602 = vmatprep.mubr.bf16.mxu0 %v1500_v11  ;;  %v1495_v15 = vld [vmem:[#allocation5 + $0x30] sm:$0xff]   ;;  %v1497_v17 = vld [vmem:[#allocation5 + $0x38] sm:$0xff]   ;;  %s1610_s25 = scalar_lea.vmem %s1609_s19, 4096  ;;  %p1611_p12 = scmp.lt.s32.totalorder %s1979_s11, %s1609_s19 }
  0x61   : > { %1278 = vmatpush3.bf16.msra.mxu0 %v1485_v3  ;;  %1396 = vmatpush3.bf16.msra.mxu1 %v1485_v3  ;;  %v1493_v13 = vld [vmem:[#allocation5 + $0x28] sm:$0xff]   ;;  %v1504_v20 = vld [vmem:[%s1876_s6 + $0x14] ss:$8 sps:$4 sm:$0xff]   ;;  %v1508_v22 = vld [vmem:[%s1876_s6 + $0x10] ss:$8 sps:$4 sm:$0xff]   ;;  %p1606_p6 = pnand %p1605_p4, %p1816_p11  ;;  %p1612_p10 = scmp.lt.s32.totalorder %s1610_s25, %s1604_s8 }
  0x62   : > { %1279 = vmatprep.subr.bf16.mxu0 %v1486_v4  ;;  %1389 = vmatprep.subr.bf16.mxu1 %v1486_v4  ;;  %v1498_v18 = vld [vmem:[%s1876_s6] ss:$8 sps:$4 sm:$0xff]   ;;  %v1506_v21 = vld [vmem:[%s1876_s6 + $0x94] ss:$8 sps:$4 sm:$0xff]   ;;  %v1509_v23 = vld [vmem:[%s1876_s6 + $0x90] ss:$8 sps:$4 sm:$0xff]  }
  0x63   : > { %666 = vmatprep.mubr.bf16.mxu1 %v1503_v12  ;;  %v1501_v19 = vld [vmem:[%s1876_s6 + $0x80] ss:$8 sps:$4 sm:$0xff]   ;;  %v1510_v24 = vld [vmem:[%s1876_s6 + $0x24] ss:$8 sps:$4 sm:$0xff]   ;;  %v1516_v28 = vld [vmem:[%s1876_s6 + $0x34] ss:$8 sps:$4 sm:$0xff]   ;;  %p1607_p8 = pneg %p1606_p6  ;;  %p1613_p0 = por %p1612_p10, %p1611_p12 }
  0x64   : > { %v1512_v25 = vld [vmem:[%s1876_s6 + $0xa4] ss:$8 sps:$4 sm:$0xff]   ;;  %v1514_v26 = vld [vmem:[%s1876_s6 + $0x20] ss:$8 sps:$4 sm:$0xff]   ;;  %v1518_v29 = vld [vmem:[%s1876_s6 + $0xb4] ss:$8 sps:$4 sm:$0xff]  }
  0x65   : > { %1280 = vmatpush3.bf16.msra.mxu0 %v1487_v5  ;;  %1397 = vmatpush3.bf16.msra.mxu1 %v1487_v5  ;;  %v1515_v27 = vld [vmem:[%s1876_s6 + $0xa0] ss:$8 sps:$4 sm:$0xff]   ;;  %v1520_v30 = vld [vmem:[%s1876_s6 + $0x30] ss:$8 sps:$4 sm:$0xff]   ;;  %v1522_v32 = vld [vmem:[%s1876_s6 + $0x44] ss:$8 sps:$4 sm:$0xff]   ;;  %p1614_p5 = pnand %p1613_p0, %p1607_p8 }
  0x66   : > { %1281 = vmatprep.subr.bf16.mxu0 %v1488_v6  ;;  %1390 = vmatprep.subr.bf16.mxu1 %v1488_v6  ;;  %v1521_v31 = vld [vmem:[%s1876_s6 + $0xb0] ss:$8 sps:$4 sm:$0xff]   ;;  %v1524_v33 = vld [vmem:[%s1876_s6 + $0xc4] ss:$8 sps:$4 sm:$0xff]   ;;  %v1526_v34 = vld [vmem:[%s1876_s6 + $0x40] ss:$8 sps:$4 sm:$0xff]  }
  0x67   : > { %v1527_v35 = vld [vmem:[%s1876_s6 + $0xc0] ss:$8 sps:$4 sm:$0xff]   ;;  %v1528_v36 = vld [vmem:[%s1876_s6 + $0x54] ss:$8 sps:$4 sm:$0xff]   ;;  %v1532_v38 = vld [vmem:[%s1876_s6 + $0x50] ss:$8 sps:$4 sm:$0xff]  }
  0x68   : > { %v1530_v37 = vld [vmem:[%s1876_s6 + $0xd4] ss:$8 sps:$4 sm:$0xff]   ;;  %v1533_v39 = vld [vmem:[%s1876_s6 + $0xd0] ss:$8 sps:$4 sm:$0xff]   ;;  %v1534_v40 = vld [vmem:[%s1876_s6 + $0x64] ss:$8 sps:$4 sm:$0xff]  }
  0x69   : > { %1282 = vmatpush3.bf16.msra.mxu0 %v1489_v7  ;;  %1398 = vmatpush3.bf16.msra.mxu1 %v1489_v7  ;;  %v1536_v41 = vld [vmem:[%s1876_s6 + $0xe4] ss:$8 sps:$4 sm:$0xff]   ;;  %v1538_v42 = vld [vmem:[%s1876_s6 + $0x60] ss:$8 sps:$4 sm:$0xff]   ;;  %v1540_v44 = vld [vmem:[%s1876_s6 + $0x74] ss:$8 sps:$4 sm:$0xff]  }
  0x6a   : > { %1283 = vmatprep.subr.bf16.mxu0 %v1490_v8  ;;  %1391 = vmatprep.subr.bf16.mxu1 %v1490_v8  ;;  %v1539_v43 = vld [vmem:[%s1876_s6 + $0xe0] ss:$8 sps:$4 sm:$0xff]   ;;  %v1542_v45 = vld [vmem:[%s1876_s6 + $0xf4] ss:$8 sps:$4 sm:$0xff]   ;;  %v1544_v46 = vld [vmem:[%s1876_s6 + $0x70] ss:$8 sps:$4 sm:$0xff]  }
  0x6b   : > { %v1545_v47 = vld [vmem:[%s1876_s6 + $0xf0] ss:$8 sps:$4 sm:$0xff]   ;;  %v1921_v50 = vld [vmem:[%s2031_s2] ss:$0 sm:$0xff] }
  0x6d   : > { %1284 = vmatpush3.bf16.msra.mxu0 %v1491_v9  ;;  %1399 = vmatpush3.bf16.msra.mxu1 %v1491_v9 }
  0x6e   : > { %1285 = vmatprep.subr.bf16.mxu0 %v1492_v10  ;;  %1392 = vmatprep.subr.bf16.mxu1 %v1492_v10 }
  0x71   : > { %1286 = vmatpush3.bf16.msra.mxu0 %v1493_v13  ;;  %1400 = vmatpush3.bf16.msra.mxu1 %v1493_v13 }
  0x72   : > { %1287 = vmatprep.subr.bf16.mxu0 %v1494_v14  ;;  %1393 = vmatprep.subr.bf16.mxu1 %v1494_v14 }
  0x75   : > { %1288 = vmatpush3.bf16.msra.mxu0 %v1495_v15  ;;  %1401 = vmatpush3.bf16.msra.mxu1 %v1495_v15 }
  0x76   : > { %1289 = vmatprep.subr.bf16.mxu0 %v1496_v16  ;;  %1394 = vmatprep.subr.bf16.mxu1 %v1496_v16 }
  0x79   : > { %1290 = vmatpush3.bf16.msra.mxu0 %v1497_v17  ;;  %1402 = vmatpush3.bf16.msra.mxu1 %v1497_v17 }
  0x7c   : > { %603 = vmatmul.mubr.bf16.vlgmr.msra.gmra.mrb[0].mxu0 %v1498_v18  ;;  %667 = vmatmul.mubr.bf16.vlgmr.msra.gmra.mrb[0].mxu1 %v1501_v19 }
  0x7d   : > { %610 = vmatprep.mubr.bf16.mxu0 %v1504_v20  ;;  %674 = vmatprep.mubr.bf16.mxu1 %v1506_v21 }
  0x84   : > { %611 = vmatmul.mubr.bf16.gmra.mrb[4].mxu0 %v1508_v22  ;;  %675 = vmatmul.mubr.bf16.gmra.mrb[4].mxu1 %v1509_v23 }
  0x85   : > { %618 = vmatprep.mubr.bf16.mxu0 %v1510_v24  ;;  %682 = vmatprep.mubr.bf16.mxu1 %v1512_v25 }
  0x8c   : > { %619 = vmatmul.mubr.bf16.gmra.mrb[8].mxu0 %v1514_v26  ;;  %683 = vmatmul.mubr.bf16.gmra.mrb[8].mxu1 %v1515_v27 }
  0x8d   : > { %626 = vmatprep.mubr.bf16.mxu0 %v1516_v28  ;;  %690 = vmatprep.mubr.bf16.mxu1 %v1518_v29 }
  0x94   : > { %627 = vmatmul.mubr.bf16.gmra.mrb[12].mxu0 %v1520_v30  ;;  %691 = vmatmul.mubr.bf16.gmra.mrb[12].mxu1 %v1521_v31 }
  0x95   : > { %634 = vmatprep.mubr.bf16.mxu0 %v1522_v32  ;;  %698 = vmatprep.mubr.bf16.mxu1 %v1524_v33 }
  0x9c   : > { %635 = vmatmul.mubr.bf16.gmra.mrb[16].mxu0 %v1526_v34  ;;  %699 = vmatmul.mubr.bf16.gmra.mrb[16].mxu1 %v1527_v35 }
  0x9d   : > { %642 = vmatprep.mubr.bf16.mxu0 %v1528_v36  ;;  %706 = vmatprep.mubr.bf16.mxu1 %v1530_v37 }
  0xa4   : > { %643 = vmatmul.mubr.bf16.gmra.mrb[20].mxu0 %v1532_v38  ;;  %707 = vmatmul.mubr.bf16.gmra.mrb[20].mxu1 %v1533_v39 }
  0xa5   : > { %650 = vmatprep.mubr.bf16.mxu0 %v1534_v40  ;;  %714 = vmatprep.mubr.bf16.mxu1 %v1536_v41 }
  0xac   : > { %651 = vmatmul.mubr.bf16.gmra.mrb[24].mxu0 %v1538_v42  ;;  %715 = vmatmul.mubr.bf16.gmra.mrb[24].mxu1 %v1539_v43 }
  0xad   : > { %658 = vmatprep.mubr.bf16.mxu0 %v1540_v44  ;;  %722 = vmatprep.mubr.bf16.mxu1 %v1542_v45 }
  0xb4   : > { %659 = vmatmul.mubr.bf16.gmra.mrb[28].mxu0 %v1544_v46  ;;  %723 = vmatmul.mubr.bf16.gmra.mrb[28].mxu1 %v1545_v47 }
 0x14f   : > { %v1291_v48 = vpop.f32.mrb[0].mxu0  ;;  %v1339_v49 = vpop.f32.mrb[0].mxu1 }
 0x150   : > { %v1292_v51 = vpop.f32.mrb[1].mxu0  ;;  %v1340_v52 = vpop.f32.mrb[1].mxu1 }
 0x151   : > { %v1293_v53 = vadd.f32 %v1292_v51, %v1291_v48  ;;  %v1341_v54 = vadd.f32 %v1340_v52, %v1339_v49  ;;  %v1294_v55 = vpop.f32.mrb[2].mxu0  ;;  %v1342_v56 = vpop.f32.mrb[2].mxu1 }
 0x152   : > { %v1295_v57 = vpop.f32.mrb[3].mxu0  ;;  %v1343_v58 = vpop.f32.mrb[3].mxu1 }
 0x153   : > { %v605_v59 = vadd.f32 %v1293_v53, %v1921_v50  ;;  %v669_v60 = vadd.f32 %v1341_v54, %v1921_v50  ;;  %v1296_v61 = vadd.f32 %v1295_v57, %v1294_v55  ;;  %v1344_v62 = vadd.f32 %v1343_v58, %v1342_v56 }
 0x155   : > { %v608_v63 = vadd.f32 %v1296_v61, %v1921_v50  ;;  %v672_v0 = vadd.f32 %v1344_v62, %v1921_v50  ;;  %v731_v1 = vmax.f32 %v605_v59, 0.0  ;;  %v747_v2 = vmax.f32 %v669_v60, 0.0 }
 0x157   : > { %v732_v3 = vmax.f32 %v608_v63, 0.0  ;;  %v748_v4 = vmax.f32 %v672_v0, 0.0  ;;  %v1297_v5 = vpop.f32.mrb[4].mxu0  ;;  %v1345_v6 = vpop.f32.mrb[4].mxu1 }
 0x158   : > { %v1298_v7 = vpop.f32.mrb[5].mxu0  ;;  %v1346_v8 = vpop.f32.mrb[5].mxu1 }
 0x159   : > { %v1183_v9 = vpack.c.bf16 %v732_v3, %v731_v1  ;;  %v1223_v10 = vpack.c.bf16 %v748_v4, %v747_v2  ;;  %v1299_v11 = vadd.f32 %v1298_v7, %v1297_v5  ;;  %v1347_v12 = vadd.f32 %v1346_v8, %v1345_v6  ;;  %v1300_v13 = vpop.f32.mrb[6].mxu0  ;;  %v1348_v14 = vpop.f32.mrb[6].mxu1 }
 0x15a   : > { %v1301_v15 = vpop.f32.mrb[7].mxu0  ;;  %v1349_v16 = vpop.f32.mrb[7].mxu1 }
 0x15b   : > { %1184 = vst [vmem:[%s1928_s9] sm:$0xff] %v1183_v9   ;;  %1267 = vst [vmem:[%s1928_s9 + $0x40] sm:$0xff] %v1223_v10   ;;  %v613_v17 = vadd.f32 %v1299_v11, %v1921_v50  ;;  %v677_v18 = vadd.f32 %v1347_v12, %v1921_v50  ;;  %v1302_v19 = vadd.f32 %v1301_v15, %v1300_v13 }
 0x15c   : > { %v1350_v20 = vadd.f32 %v1349_v16, %v1348_v14 }
 0x15d   : > { %v616_v21 = vadd.f32 %v1302_v19, %v1921_v50  ;;  %v733_v23 = vmax.f32 %v613_v17, 0.0  ;;  %v749_v24 = vmax.f32 %v677_v18, 0.0 }
 0x15e   : > { %v680_v22 = vadd.f32 %v1350_v20, %v1921_v50 }
 0x15f   : > { %v734_v25 = vmax.f32 %v616_v21, 0.0  ;;  %v1303_v27 = vpop.f32.mrb[8].mxu0  ;;  %v1351_v28 = vpop.f32.mrb[8].mxu1 }
 0x160   : > { %v750_v26 = vmax.f32 %v680_v22, 0.0  ;;  %v1304_v29 = vpop.f32.mrb[9].mxu0  ;;  %v1352_v30 = vpop.f32.mrb[9].mxu1 }
 0x161   : > { %v1188_v31 = vpack.c.bf16 %v734_v25, %v733_v23  ;;  %v1305_v33 = vadd.f32 %v1304_v29, %v1303_v27  ;;  %v1353_v34 = vadd.f32 %v1352_v30, %v1351_v28  ;;  %v1306_v35 = vpop.f32.mrb[10].mxu0  ;;  %v1354_v36 = vpop.f32.mrb[10].mxu1 }
 0x162   : > { %v1228_v32 = vpack.c.bf16 %v750_v26, %v749_v24  ;;  %v1307_v37 = vpop.f32.mrb[11].mxu0  ;;  %v1355_v38 = vpop.f32.mrb[11].mxu1 }
 0x163   : > { %1260 = vst [vmem:[%s1928_s9 + $0x8] sm:$0xff] %v1188_v31   ;;  %v621_v39 = vadd.f32 %v1305_v33, %v1921_v50  ;;  %v685_v40 = vadd.f32 %v1353_v34, %v1921_v50  ;;  %v1308_v41 = vadd.f32 %v1307_v37, %v1306_v35  ;;  %v1356_v42 = vadd.f32 %v1355_v38, %v1354_v36 }
 0x164   : > { %1268 = vst [vmem:[%s1928_s9 + $0x48] sm:$0xff] %v1228_v32  }
 0x165   : > { %v624_v43 = vadd.f32 %v1308_v41, %v1921_v50  ;;  %v688_v44 = vadd.f32 %v1356_v42, %v1921_v50  ;;  %v735_v45 = vmax.f32 %v621_v39, 0.0  ;;  %v751_v46 = vmax.f32 %v685_v40, 0.0 }
 0x167   : > { %v736_v47 = vmax.f32 %v624_v43, 0.0  ;;  %v752_v48 = vmax.f32 %v688_v44, 0.0  ;;  %v1309_v49 = vpop.f32.mrb[12].mxu0  ;;  %v1357_v51 = vpop.f32.mrb[12].mxu1 }
 0x168   : > { %v1310_v52 = vpop.f32.mrb[13].mxu0  ;;  %v1358_v53 = vpop.f32.mrb[13].mxu1 }
 0x169   : > { %v1193_v54 = vpack.c.bf16 %v736_v47, %v735_v45  ;;  %v1233_v55 = vpack.c.bf16 %v752_v48, %v751_v46  ;;  %v1311_v56 = vadd.f32 %v1310_v52, %v1309_v49  ;;  %v1359_v57 = vadd.f32 %v1358_v53, %v1357_v51  ;;  %v1312_v58 = vpop.f32.mrb[14].mxu0  ;;  %v1360_v59 = vpop.f32.mrb[14].mxu1 }
 0x16a   : > { %v1313_v60 = vpop.f32.mrb[15].mxu0  ;;  %v1361_v61 = vpop.f32.mrb[15].mxu1 }
 0x16b   : > { %1261 = vst [vmem:[%s1928_s9 + $0x10] sm:$0xff] %v1193_v54   ;;  %1269 = vst [vmem:[%s1928_s9 + $0x50] sm:$0xff] %v1233_v55   ;;  %v629_v62 = vadd.f32 %v1311_v56, %v1921_v50  ;;  %v693_v63 = vadd.f32 %v1359_v57, %v1921_v50  ;;  %v1314_v0 = vadd.f32 %v1313_v60, %v1312_v58 }
 0x16c   : > { %v1362_v1 = vadd.f32 %v1361_v61, %v1360_v59 }
 0x16d   : > { %v632_v2 = vadd.f32 %v1314_v0, %v1921_v50  ;;  %v737_v4 = vmax.f32 %v629_v62, 0.0  ;;  %v753_v5 = vmax.f32 %v693_v63, 0.0 }
 0x16e   : > { %v696_v3 = vadd.f32 %v1362_v1, %v1921_v50 }
 0x16f   : > { %v738_v6 = vmax.f32 %v632_v2, 0.0  ;;  %v1315_v8 = vpop.f32.mrb[16].mxu0  ;;  %v1363_v9 = vpop.f32.mrb[16].mxu1 }
 0x170   : > { %v754_v7 = vmax.f32 %v696_v3, 0.0  ;;  %v1316_v10 = vpop.f32.mrb[17].mxu0  ;;  %v1364_v11 = vpop.f32.mrb[17].mxu1 }
 0x171   : > { %v1198_v12 = vpack.c.bf16 %v738_v6, %v737_v4  ;;  %v1317_v14 = vadd.f32 %v1316_v10, %v1315_v8  ;;  %v1365_v15 = vadd.f32 %v1364_v11, %v1363_v9  ;;  %v1318_v16 = vpop.f32.mrb[18].mxu0  ;;  %v1366_v17 = vpop.f32.mrb[18].mxu1 }
 0x172   : > { %v1238_v13 = vpack.c.bf16 %v754_v7, %v753_v5  ;;  %v1319_v18 = vpop.f32.mrb[19].mxu0  ;;  %v1367_v19 = vpop.f32.mrb[19].mxu1 }
 0x173   : > { %1262 = vst [vmem:[%s1928_s9 + $0x18] sm:$0xff] %v1198_v12   ;;  %v637_v20 = vadd.f32 %v1317_v14, %v1921_v50  ;;  %v701_v21 = vadd.f32 %v1365_v15, %v1921_v50  ;;  %v1320_v22 = vadd.f32 %v1319_v18, %v1318_v16  ;;  %v1368_v23 = vadd.f32 %v1367_v19, %v1366_v17 }
 0x174   : > { %1270 = vst [vmem:[%s1928_s9 + $0x58] sm:$0xff] %v1238_v13  }
 0x175   : > { %v640_v24 = vadd.f32 %v1320_v22, %v1921_v50  ;;  %v704_v25 = vadd.f32 %v1368_v23, %v1921_v50  ;;  %v739_v26 = vmax.f32 %v637_v20, 0.0  ;;  %v755_v27 = vmax.f32 %v701_v21, 0.0 }
 0x177   : > { %v740_v28 = vmax.f32 %v640_v24, 0.0  ;;  %v756_v29 = vmax.f32 %v704_v25, 0.0  ;;  %v1321_v30 = vpop.f32.mrb[20].mxu0  ;;  %v1369_v31 = vpop.f32.mrb[20].mxu1 }
 0x178   : > { %v1322_v32 = vpop.f32.mrb[21].mxu0  ;;  %v1370_v33 = vpop.f32.mrb[21].mxu1 }
 0x179   : > { %v1203_v34 = vpack.c.bf16 %v740_v28, %v739_v26  ;;  %v1243_v35 = vpack.c.bf16 %v756_v29, %v755_v27  ;;  %v1323_v36 = vadd.f32 %v1322_v32, %v1321_v30  ;;  %v1371_v37 = vadd.f32 %v1370_v33, %v1369_v31  ;;  %v1324_v38 = vpop.f32.mrb[22].mxu0  ;;  %v1372_v39 = vpop.f32.mrb[22].mxu1 }
 0x17a   : > { %v1325_v40 = vpop.f32.mrb[23].mxu0  ;;  %v1373_v41 = vpop.f32.mrb[23].mxu1 }
 0x17b   : > { %1263 = vst [vmem:[%s1928_s9 + $0x20] sm:$0xff] %v1203_v34   ;;  %1271 = vst [vmem:[%s1928_s9 + $0x60] sm:$0xff] %v1243_v35   ;;  %v645_v42 = vadd.f32 %v1323_v36, %v1921_v50  ;;  %v709_v43 = vadd.f32 %v1371_v37, %v1921_v50  ;;  %v1326_v44 = vadd.f32 %v1325_v40, %v1324_v38 }
 0x17c   : > { %v1374_v45 = vadd.f32 %v1373_v41, %v1372_v39 }
 0x17d   : > { %v648_v46 = vadd.f32 %v1326_v44, %v1921_v50  ;;  %v741_v48 = vmax.f32 %v645_v42, 0.0  ;;  %v757_v49 = vmax.f32 %v709_v43, 0.0 }
 0x17e   : > { %v712_v47 = vadd.f32 %v1374_v45, %v1921_v50 }
 0x17f   : > { %v742_v51 = vmax.f32 %v648_v46, 0.0  ;;  %v1327_v53 = vpop.f32.mrb[24].mxu0  ;;  %v1375_v54 = vpop.f32.mrb[24].mxu1 }
 0x180   : > { %v758_v52 = vmax.f32 %v712_v47, 0.0  ;;  %v1328_v55 = vpop.f32.mrb[25].mxu0  ;;  %v1376_v56 = vpop.f32.mrb[25].mxu1 }
 0x181   : > { %v1208_v57 = vpack.c.bf16 %v742_v51, %v741_v48  ;;  %v1329_v59 = vadd.f32 %v1328_v55, %v1327_v53  ;;  %v1377_v60 = vadd.f32 %v1376_v56, %v1375_v54  ;;  %v1330_v61 = vpop.f32.mrb[26].mxu0  ;;  %v1378_v62 = vpop.f32.mrb[26].mxu1 }
 0x182   : > { %v1248_v58 = vpack.c.bf16 %v758_v52, %v757_v49  ;;  %v1331_v63 = vpop.f32.mrb[27].mxu0  ;;  %v1379_v0 = vpop.f32.mrb[27].mxu1 }
 0x183   : > { %1264 = vst [vmem:[%s1928_s9 + $0x28] sm:$0xff] %v1208_v57   ;;  %v653_v1 = vadd.f32 %v1329_v59, %v1921_v50  ;;  %v717_v2 = vadd.f32 %v1377_v60, %v1921_v50  ;;  %v1332_v3 = vadd.f32 %v1331_v63, %v1330_v61  ;;  %v1380_v4 = vadd.f32 %v1379_v0, %v1378_v62 }
 0x184   : > { %1272 = vst [vmem:[%s1928_s9 + $0x68] sm:$0xff] %v1248_v58  }
 0x185   : > { %v656_v5 = vadd.f32 %v1332_v3, %v1921_v50  ;;  %v720_v6 = vadd.f32 %v1380_v4, %v1921_v50  ;;  %v743_v7 = vmax.f32 %v653_v1, 0.0  ;;  %v759_v8 = vmax.f32 %v717_v2, 0.0 }
 0x187   : > { %v744_v9 = vmax.f32 %v656_v5, 0.0  ;;  %v760_v10 = vmax.f32 %v720_v6, 0.0  ;;  %v1333_v11 = vpop.f32.mrb[28].mxu0  ;;  %v1381_v12 = vpop.f32.mrb[28].mxu1 }
 0x188   : > { %v1334_v13 = vpop.f32.mrb[29].mxu0  ;;  %v1382_v14 = vpop.f32.mrb[29].mxu1 }
 0x189   : > { %v1213_v15 = vpack.c.bf16 %v744_v9, %v743_v7  ;;  %v1253_v16 = vpack.c.bf16 %v760_v10, %v759_v8  ;;  %v1335_v17 = vadd.f32 %v1334_v13, %v1333_v11  ;;  %v1383_v18 = vadd.f32 %v1382_v14, %v1381_v12  ;;  %v1336_v19 = vpop.f32.mrb[30].mxu0  ;;  %v1384_v20 = vpop.f32.mrb[30].mxu1 }
 0x18a   : > { %v1337_v21 = vpop.f32.mrb[31].mxu0  ;;  %v1385_v22 = vpop.f32.mrb[31].mxu1 }
 0x18b   : > { %1265 = vst [vmem:[%s1928_s9 + $0x30] sm:$0xff] %v1213_v15   ;;  %1273 = vst [vmem:[%s1928_s9 + $0x70] sm:$0xff] %v1253_v16   ;;  %v661_v23 = vadd.f32 %v1335_v17, %v1921_v50  ;;  %v725_v24 = vadd.f32 %v1383_v18, %v1921_v50  ;;  %v1338_v25 = vadd.f32 %v1337_v21, %v1336_v19 }
 0x18c   : > { %v1386_v26 = vadd.f32 %v1385_v22, %v1384_v20 }
 0x18d   : > { %v664_v27 = vadd.f32 %v1338_v25, %v1921_v50  ;;  %v745_v29 = vmax.f32 %v661_v23, 0.0  ;;  %v761_v30 = vmax.f32 %v725_v24, 0.0 }
 0x18e   : > { %v728_v28 = vadd.f32 %v1386_v26, %v1921_v50 }
 0x18f   : > { %v746_v31 = vmax.f32 %v664_v27, 0.0 }
 0x190   : > { %v762_v32 = vmax.f32 %v728_v28, 0.0 }
 0x191   : > { %v1218_v33 = vpack.c.bf16 %v746_v31, %v745_v29 }
 0x192   : > { %v1258_v34 = vpack.c.bf16 %v762_v32, %v761_v30 }
 0x193   : > { %1266 = vst [vmem:[%s1928_s9 + $0x38] sm:$0xff] %v1218_v33  }
 0x194   : > { %1274 = vst [vmem:[%s1928_s9 + $0x78] sm:$0xff] %v1258_v34  }
 0x195   : > { %1617 = shalt.err (!%p1614_p5)
}
 0x196   : > { %s1618_s29 = scalar_lea.hbm %s1977_s7, 2048  ;;  %s1622_s20 = scalar_lea.hbm %s2032_s3, 16384 }
 0x197   : > { %p1619_p9 = scmp.ne.s32.totalorder %s1977_s7, %s1618_s29  ;;  %p1623_p3 = scmp.lt.u32.totalorder %s1977_s7, %s2032_s3 }
 0x198   : > { %p1624_p7 = scmp.lt.u32.totalorder %s1622_s20, %s1618_s29  ;;  %p1626_p4 = scmp.lt.u32.totalorder %s1618_s29, %s1977_s7 }
 0x199   : > { %p1620_p1 = pnand %p1619_p9, %p1816_p11 }
 0x19a   : > { %p1625_p13 = por %p1624_p7, %p1623_p3 }
 0x19b   : > { %p1621_p2 = pneg %p1620_p1 }
 0x19c   : > { %p1627_p6 = por %p1626_p4, %p1625_p13 }
 0x19e   : > { %p1628_p8 = pnand %p1627_p6, %p1621_p2 }
 0x1a0   : > { %1631 = shalt.err (!%p1628_p8)
}
 0x1a1   : > { %s1699_s9 = smov 64   ;;  %s1700_s10 = smov 4  }
 0x1a2   : > { %1409 = dma.vmem_to_hbm [thread:$0]  (%p1816_p11), %s1979_s11, 2048, %s1977_s7, %s924_s15, %s1699_s9, %s1699_s9, %s1700_s10  }
 0x1a3 PF: > { %p1426_p12 = scmp.ge.s32.totalorder %s1690_s17, 2  ;;  %s953_s18 = sand.u32 1, %s1670_s12  }
 0x1a4   : > { %p2050_p10 = scmp.ne.s32.totalorder %s2040_s23, 0  ;;  %s954_s26 = scalar_lea.sflag [#allocation4], %s953_s18 }
 0x1a6   : > { %p1420_p0 = pnand %p1426_p12, %p2050_p10 }
 0x1a8   : > { %1665 = dma.done.wait (!%p1420_p0), %s954_s26, 2048  }
 0x1a9   : > { %1667 = vsyncadd (!%p1420_p0), %s954_s26, 4294965248  ;;  %s20_s17 = sadd.s32 1, %s1690_s17   ;;  %s2051_s12 = smov %s1674_s13 }
 0x1aa   : > { %p17_p5 = scmp.ge.s32.totalorder %s20_s17, 10   ;;  %s2052_s13 = smov %s1678_s14 }
 0x1ab   : > { %s2053_s14 = smov %s1825_s5  ;;  %s2054_s15 = smov %s1686_s16 }
 0x1ac   : > { %s2055_s16 = smov %s2057_s28  ;;  %19 = sbr.rel (!%p17_p5) target bundleno = 7 (0x7), region = 85 }
 0x1b3   :  { %959 = vsyncpa [#allocation3], 1 }
 0x1b4   :  { %961 = vsyncpa [#allocation3 + $0x1], 1 }
 0x1b5   :  { %962 = vsyncpa [#allocation6], 1 }
 0x1b6   :  { %963 = vsyncpa [#allocation4], 1 }
 0x1b7   :  { %965 = vsyncpa [#allocation4 + $0x1], 1 }

</bundles_post_ra>
